<compile_context>
chip_gen: v7x
topology: tpu7x:2x2x1
jax: 0.10.0
libtpu: 0.0.40
codegen_flags: <defaults>
</compile_context>

<pallas_src>
import functools

import jax
import jax.numpy as jnp
from jax.experimental import pallas as pl
from jax.experimental.pallas import tpu as pltpu


def _round_up(v: int, m: int) -> int:
    return (v + m - 1) // m * m


def _pick_tk(npad: int, tk_max: int) -> int:
    """Largest multiple of 128 that divides npad and is <= tk_max."""
    tk = max(128, (min(tk_max, npad) // 128) * 128)
    while npad % tk:
        tk -= 128
    return tk


def _sage_layer_kernel(a_ref, xn_ref, xr_ref, dinv_ref, w_ref, b_ref, o_ref,
                       acc_ref, *, hp: int, tk: int, apply_relu: bool,
                       resident: bool):
    # a_ref:    (TM, TK)        adjacency edge-count tile (bf16, unnormalized)
    # xn_ref:   (Npad, Hp) bf16 resident feature slab          (resident=True)
    #           (TK,  Hp)  bf16 streamed neighbor-feature tile (resident=False)
    # xr_ref:   (TM, Hp)   bf16 root (self) features for this row tile
    # dinv_ref: (TM, 1)    f32  1 / in_degree
    # w_ref:    (2Hp, Hp)  bf16 stacked [W_l; W_r] in (in, out) layout
    # b_ref:    (1, Hp)    f32  lin_l bias
    # o_ref:    (TM, Hp)        output tile
    # acc_ref:  (TM, 2Hp)  f32  [:, :Hp] = count-sum accumulator,
    #                           [:, Hp:] = root features (set at k == 0)
    k = pl.program_id(1)
    tm = acc_ref.shape[0]

    @pl.when(k == 0)
    def _init():
        acc_ref[:, :hp] = jnp.zeros((tm, hp), jnp.float32)
        acc_ref[:, hp:] = xr_ref[...].astype(jnp.float32)

    if resident:
        start = pl.multiple_of(k * tk, 128)
        xk = xn_ref[pl.ds(start, tk), :]
    else:
        xk = xn_ref[...]

    # bf16 x bf16 on the MXU, f32 accumulation.
    acc_ref[:, :hp] += jnp.dot(a_ref[...], xk,
                               preferred_element_type=jnp.float32)

    @pl.when(k == pl.num_programs(1) - 1)
    def _finalize():
        # Exact mean: counts were accumulated in f32; scale by 1/deg here.
        acc_ref[:, :hp] *= dinv_ref[...]
        # Fused projection: [agg | x_root] @ [W_l; W_r] + b_l  (bf16 MXU path).
        out = jnp.dot(acc_ref[...].astype(jnp.bfloat16), w_ref[...],
                      preferred_element_type=jnp.float32) + b_ref[...]
        if apply_relu:
            out = jnp.maximum(out, 0.0)
        o_ref[...] = out.astype(o_ref.dtype)


def sage_conv_layer(adj_counts, x, deg_inv, w_stacked, bias, *, apply_relu,
                    tm, tk, resident, out_dtype):
    """out = mean_agg(adj, x) @ W_l + b_l + x @ W_r  [+ relu]; pre-padded."""
    npad, hp = x.shape
    assert npad % tm == 0 and npad % tk == 0 and hp % 128 == 0
    assert adj_counts.shape == (npad, npad)
    assert deg_inv.shape == (npad, 1)
    assert w_stacked.shape == (2 * hp, hp) and bias.shape == (1, hp)

    if resident:
        # Whole feature slab stays in VMEM across the grid (index never moves).
        # TODO(synk): pipeline_mode=pl.Buffered(1) would reclaim its 2nd buffer.
        xn_spec = pl.BlockSpec((npad, hp), lambda i, k: (0, 0))
    else:
        xn_spec = pl.BlockSpec((tk, hp), lambda i, k: (k, 0))

    kernel = functools.partial(_sage_layer_kernel, hp=hp, tk=tk,
                               apply_relu=apply_relu, resident=resident)
    return pl.pallas_call(
        kernel,
        out_shape=jax.ShapeDtypeStruct((npad, hp), out_dtype),
        grid_spec=pltpu.PrefetchScalarGridSpec(
            num_scalar_prefetch=0,
            grid=(npad // tm, npad // tk),
            in_specs=[
                pl.BlockSpec((tm, tk), lambda i, k: (i, k)),      # adjacency
                xn_spec,                                          # neighbor feats
                pl.BlockSpec((tm, hp), lambda i, k: (i, 0)),      # root feats
                pl.BlockSpec((tm, 1), lambda i, k: (i, 0)),       # 1/in_degree
                pl.BlockSpec((2 * hp, hp), lambda i, k: (0, 0)),  # [W_l; W_r]
                pl.BlockSpec((1, hp), lambda i, k: (0, 0)),       # bias
            ],
            out_specs=pl.BlockSpec((tm, hp), lambda i, k: (i, 0)),
            scratch_shapes=[pltpu.VMEM((tm, 2 * hp), jnp.float32)],
        ),
        compiler_params=pltpu.CompilerParams(
            dimension_semantics=("parallel", "arbitrary"),
            vmem_limit_bytes=48 * 1024 * 1024,
        ),
    )(adj_counts, x, x, deg_inv, w_stacked, bias)


def edge_index_to_counts(edge_index, num_nodes_padded, dtype=jnp.bfloat16):
    """Unnormalized edge counts A[i, j] = #edges(j -> i), plus 1/in_degree."""
    src = edge_index[0]
    dst = edge_index[1]
    counts = jnp.zeros((num_nodes_padded, num_nodes_padded),
                       jnp.float32).at[dst, src].add(1.0)
    deg = jnp.zeros((num_nodes_padded,), jnp.float32).at[dst].add(1.0)
    # Rows with no in-edges have an all-zero count row -> agg is 0 regardless.
    deg_inv = 1.0 / jnp.maximum(deg, 1.0)
    return counts.astype(dtype), deg_inv[:, None]


def gs_forward(x, edge_index, params, *, tm=256, tk=2048,
               adj_dtype=jnp.bfloat16, feat_dtype=jnp.bfloat16):
    n, h = x.shape
    hp = _round_up(h, 128)           # lane-dense hidden dim

    # --- tile selection ------------------------------------------------------
    n128 = _round_up(n, 128)
    tm = min(tm, n128)
    # Keep >= 2 row tiles where possible so the "parallel" axis can split
    # across v7x's two TensorCores.
    if n128 // tm < 2 and n128 >= 256:
        tm = max(128, (n128 // 2) // 128 * 128)
    npad = _round_up(n, tm)
    tk = _pick_tk(npad, tk)

    # Feature slab VMEM-resident when (double-buffered) it fits comfortably.
    feat_bytes = npad * hp * jnp.dtype(feat_dtype).itemsize
    resident = 2 * feat_bytes <= 16 * 1024 * 1024

    # --- padded / packed operands (plain-JAX glue) ---------------------------
    xp = jnp.zeros((npad, hp), feat_dtype).at[:n, :h].set(x.astype(feat_dtype))

    # One bf16 count matrix + f32 1/deg vector, reused by both layers.
    adj, deg_inv = edge_index_to_counts(edge_index, npad, dtype=adj_dtype)

    def stack_and_pad(w_l, w_r, b):
        wl = jnp.zeros((hp, hp), jnp.float32).at[:h, :h].set(w_l)
        wr = jnp.zeros((hp, hp), jnp.float32).at[:h, :h].set(w_r)
        bp = jnp.zeros((1, hp), jnp.float32).at[:, :h].set(b)
        return jnp.concatenate([wl, wr], axis=0).astype(jnp.bfloat16), bp

    w1, b1 = stack_and_pad(params["w_l1"], params["w_r1"], params["b1"])
    w2, b2 = stack_and_pad(params["w_l2"], params["w_r2"], params["b2"])

    # --- two fused SAGE layers ------------------------------------------------
    h1 = sage_conv_layer(adj, xp, deg_inv, w1, b1, apply_relu=True,
                         tm=tm, tk=tk, resident=resident, out_dtype=feat_dtype)
    out = sage_conv_layer(adj, h1, deg_inv, w2, b2, apply_relu=False,
                          tm=tm, tk=tk, resident=resident,
                          out_dtype=jnp.float32)
    return out[:n, :h]


def init_params(key, hidden):
    # Weights stored directly in (in, out) layout == PyTorch Linear weight.T
    ks = jax.random.split(key, 6)
    scale = 1.0 / jnp.sqrt(hidden)
    return {
        "w_l1": jax.random.uniform(ks[0], (hidden, hidden), jnp.float32, -scale, scale),
        "w_r1": jax.random.uniform(ks[1], (hidden, hidden), jnp.float32, -scale, scale),
        "b1": jax.random.uniform(ks[2], (1, hidden), jnp.float32, -scale, scale),
        "w_l2": jax.random.uniform(ks[3], (hidden, hidden), jnp.float32, -scale, scale),
        "w_r2": jax.random.uniform(ks[4], (hidden, hidden), jnp.float32, -scale, scale),
        "b2": jax.random.uniform(ks[5], (1, hidden), jnp.float32, -scale, scale),
    }


if __name__ == "__main__":
    num_nodes = 16
    hidden = 32
    num_edges = 48

    key = jax.random.PRNGKey(0)
    kx, ke1, ke2, kp = jax.random.split(key, 4)

    x = jax.random.normal(kx, (num_nodes, hidden), jnp.float32)
    edge_index = jnp.stack([
        jax.random.randint(ke1, (num_edges,), 0, num_nodes),
        jax.random.randint(ke2, (num_edges,), 0, num_nodes),
    ], axis=0).astype(jnp.int32)

    params = init_params(kp, hidden)

    out = gs_forward(x, edge_index, params)
    jax.block_until_ready(out)

    # --- pure-JAX reference mirroring the kernel's precision choices ----------
    def bf(a):
        return a.astype(jnp.bfloat16).astype(jnp.float32)

    counts = jnp.zeros((num_nodes, num_nodes), jnp.float32)
    counts = counts.at[edge_index[1], edge_index[0]].add(1.0)
    deg = jnp.zeros((num_nodes,), jnp.float32).at[edge_index[1]].add(1.0)
    dinv = (1.0 / jnp.maximum(deg, 1.0))[:, None]
    counts = bf(counts)  # kernel stores counts in bf16 (exact small integers)

    def ref_layer(xin, w_l, w_r, b, relu_flag):
        agg = (counts @ xin) * dinv                      # f32 accumulate + exact mean
        acc = bf(jnp.concatenate([agg, xin], axis=1))    # finalize bf16 cast
        w = bf(jnp.concatenate([w_l, w_r], axis=0))      # bf16 weights
        o = acc @ w + b
        return jnp.maximum(o, 0.0) if relu_flag else o

    x0 = bf(x)
    h1_ref = bf(ref_layer(x0, params["w_l1"], params["w_r1"], params["b1"], True))
    ref = ref_layer(h1_ref, params["w_l2"], params["w_r2"], params["b2"], False)

    err = float(jnp.max(jnp.abs(out - ref)))
    assert jnp.allclose(out, ref, atol=2e-2, rtol=2e-2), err

    print("KERNEL_OK")
</pallas_src>

<mosaic_0001>
module attributes {stable_mosaic.version = 11 : i64} {
  func.func @_sage_layer_kernel(%arg0: i32, %arg1: i32, %arg2: memref<128x128xbf16, #tpu.memory_space<vmem>>, %arg3: memref<128x128xbf16, #tpu.memory_space<vmem>>, %arg4: memref<128x128xbf16, #tpu.memory_space<vmem>>, %arg5: memref<128x1xf32, #tpu.memory_space<vmem>>, %arg6: memref<256x128xbf16, #tpu.memory_space<vmem>>, %arg7: memref<1x128xf32, #tpu.memory_space<vmem>>, %arg8: memref<128x128xbf16, #tpu.memory_space<vmem>>, %arg9: memref<128x256xf32, #tpu.memory_space<vmem>>) attributes {dimension_semantics = [#tpu.dimension_semantics<parallel>, #tpu.dimension_semantics<arbitrary>], iteration_bounds = array<i64: 1, 1>, scalar_prefetch = 0 : i64, scratch_operands = 1 : i64, tpu.core_type = #tpu.core_type<tc>, window_params = [{transform_indices = @transform_0, window_bounds = array<i64: 128, 128>}, {pipeline_mode = #tpu.pipeline_mode<synchronous>, transform_indices = @transform_1, window_bounds = array<i64: 128, 128>}, {transform_indices = @transform_2, window_bounds = array<i64: 128, 128>}, {transform_indices = @transform_3, window_bounds = array<i64: 128, 1>}, {pipeline_mode = #tpu.pipeline_mode<synchronous>, transform_indices = @transform_4, window_bounds = array<i64: 256, 128>}, {pipeline_mode = #tpu.pipeline_mode<synchronous>, transform_indices = @transform_5, window_bounds = array<i64: 1, 128>}, {transform_indices = @transform_6, window_bounds = array<i64: 128, 128>}]} {
    %c0_i32 = arith.constant 0 : i32
    %0 = arith.cmpi eq, %arg1, %c0_i32 : i32
    %1 = arith.extui %0 : i1 to i32
    %c0_i32_0 = arith.constant 0 : i32
    %2 = arith.cmpi ne, %1, %c0_i32_0 : i32
    scf.if %2 {
      %cst_9 = arith.constant 0.000000e+00 : f32
      %15 = vector.broadcast %cst_9 : f32 to vector<128x128xf32>
      %c0_10 = arith.constant 0 : index
      %c0_11 = arith.constant 0 : index
      %16 = vector.load %arg9[%c0_10, %c0_11] : memref<128x256xf32, #tpu.memory_space<vmem>>, vector<128x128xf32>
      tpu.vector_store %arg9[%c0_10, %c0_11], %15 {strides = array<i32>} : memref<128x256xf32, #tpu.memory_space<vmem>>, vector<128x128xf32>,
      %c0_12 = arith.constant 0 : index
      %c0_13 = arith.constant 0 : index
      %17 = vector.load %arg4[%c0_12, %c0_13] : memref<128x128xbf16, #tpu.memory_space<vmem>>, vector<128x128xbf16>
      %18 = arith.extf %17 : vector<128x128xbf16> to vector<128x128xf32>
      %c0_14 = arith.constant 0 : index
      %c128 = arith.constant 128 : index
      %19 = vector.load %arg9[%c0_14, %c128] : memref<128x256xf32, #tpu.memory_space<vmem>>, vector<128x128xf32>
      tpu.vector_store %arg9[%c0_14, %c128], %18 {strides = array<i32>} : memref<128x256xf32, #tpu.memory_space<vmem>>, vector<128x128xf32>,
    } else {
    }
    %c128_i32 = arith.constant 128 : i32
    %3 = arith.muli %arg1, %c128_i32 : i32
    %4 = tpu.assume_multiple %3, 128 : i32
    %5 = arith.index_cast %4 : i32 to index
    %c0 = arith.constant 0 : index
    %6 = vector.load %arg3[%5, %c0] : memref<128x128xbf16, #tpu.memory_space<vmem>>, vector<128x128xbf16>
    %c0_1 = arith.constant 0 : index
    %c0_2 = arith.constant 0 : index
    %7 = vector.load %arg9[%c0_1, %c0_2] : memref<128x256xf32, #tpu.memory_space<vmem>>, vector<128x128xf32>
    %c0_3 = arith.constant 0 : index
    %c0_4 = arith.constant 0 : index
    %8 = vector.load %arg2[%c0_3, %c0_4] : memref<128x128xbf16, #tpu.memory_space<vmem>>, vector<128x128xbf16>
    %cst = arith.constant dense<0.000000e+00> : vector<128x128xf32>
    %9 = tpu.matmul %8, %6, %cst {dimension_numbers = #tpu.dot_dimension_numbers<[1], [0], [0], [1], [0, 0, 1, 1], [], []>} : vector<128x128xbf16>, vector<128x128xbf16>, vector<128x128xf32> -> vector<128x128xf32>
    %10 = arith.addf %7, %9 : vector<128x128xf32>
    %c0_5 = arith.constant 0 : index
    %c0_6 = arith.constant 0 : index
    %11 = vector.load %arg9[%c0_5, %c0_6] : memref<128x256xf32, #tpu.memory_space<vmem>>, vector<128x128xf32>
    tpu.vector_store %arg9[%c0_5, %c0_6], %10 {strides = array<i32>} : memref<128x256xf32, #tpu.memory_space<vmem>>, vector<128x128xf32>,
    %c0_i32_7 = arith.constant 0 : i32
    %12 = arith.cmpi eq, %arg1, %c0_i32_7 : i32
    %13 = arith.extui %12 : i1 to i32
    %c0_i32_8 = arith.constant 0 : i32
    %14 = arith.cmpi ne, %13, %c0_i32_8 : i32
    scf.if %14 {
      %c0_9 = arith.constant 0 : index
      %c0_10 = arith.constant 0 : index
      %15 = vector.load %arg9[%c0_9, %c0_10] : memref<128x256xf32, #tpu.memory_space<vmem>>, vector<128x128xf32>
      %c0_11 = arith.constant 0 : index
      %c0_12 = arith.constant 0 : index
      %16 = vector.load %arg5[%c0_11, %c0_12] : memref<128x1xf32, #tpu.memory_space<vmem>>, vector<128x1xf32>
      %17 = vector.broadcast %16 : vector<128x1xf32> to vector<128x128xf32>
      %18 = arith.mulf %15, %17 : vector<128x128xf32>
      %c0_13 = arith.constant 0 : index
      %c0_14 = arith.constant 0 : index
      %19 = vector.load %arg9[%c0_13, %c0_14] : memref<128x256xf32, #tpu.memory_space<vmem>>, vector<128x128xf32>
      tpu.vector_store %arg9[%c0_13, %c0_14], %18 {strides = array<i32>} : memref<128x256xf32, #tpu.memory_space<vmem>>, vector<128x128xf32>,
      %c0_15 = arith.constant 0 : index
      %c0_16 = arith.constant 0 : index
      %20 = vector.load %arg9[%c0_15, %c0_16] : memref<128x256xf32, #tpu.memory_space<vmem>>, vector<128x256xf32>
      %21 = arith.truncf %20 : vector<128x256xf32> to vector<128x256xbf16>
      %c0_17 = arith.constant 0 : index
      %c0_18 = arith.constant 0 : index
      %22 = vector.load %arg6[%c0_17, %c0_18] : memref<256x128xbf16, #tpu.memory_space<vmem>>, vector<256x128xbf16>
      %cst_19 = arith.constant dense<0.000000e+00> : vector<128x128xf32>
      %23 = tpu.matmul %21, %22, %cst_19 {dimension_numbers = #tpu.dot_dimension_numbers<[1], [0], [0], [1], [0, 0, 1, 1], [], []>} : vector<128x256xbf16>, vector<256x128xbf16>, vector<128x128xf32> -> vector<128x128xf32>
      %c0_20 = arith.constant 0 : index
      %c0_21 = arith.constant 0 : index
      %24 = vector.load %arg7[%c0_20, %c0_21] : memref<1x128xf32, #tpu.memory_space<vmem>>, vector<1x128xf32>
      %25 = vector.broadcast %24 : vector<1x128xf32> to vector<128x128xf32>
      %26 = arith.addf %23, %25 : vector<128x128xf32>
      %cst_22 = arith.constant 0.000000e+00 : f32
      %27 = vector.broadcast %cst_22 : f32 to vector<128x128xf32>
      %28 = arith.maximumf %26, %27 : vector<128x128xf32>
      %29 = arith.truncf %28 : vector<128x128xf32> to vector<128x128xbf16>
      %c0_23 = arith.constant 0 : index
      %c0_24 = arith.constant 0 : index
      %30 = vector.load %arg8[%c0_23, %c0_24] : memref<128x128xbf16, #tpu.memory_space<vmem>>, vector<128x128xbf16>
      tpu.vector_store %arg8[%c0_23, %c0_24], %29 {strides = array<i32>} : memref<128x128xbf16, #tpu.memory_space<vmem>>, vector<128x128xbf16>,
    } else {
    }
    return
  }
  func.func @transform_0(%arg0: i32, %arg1: i32) -> (i32, i32) {
    %c0_i32 = arith.constant 0 : i32
    return %arg0, %arg1 : i32, i32
  }
  func.func @transform_1(%arg0: i32, %arg1: i32) -> (i32, i32) {
    %c0_i32 = arith.constant 0 : i32
    %c0_i32_0 = arith.constant 0 : i32
    %c0_i32_1 = arith.constant 0 : i32
    return %c0_i32, %c0_i32_0 : i32, i32
  }
  func.func @transform_2(%arg0: i32, %arg1: i32) -> (i32, i32) {
    %c0_i32 = arith.constant 0 : i32
    %c0_i32_0 = arith.constant 0 : i32
    return %arg0, %c0_i32 : i32, i32
  }
  func.func @transform_3(%arg0: i32, %arg1: i32) -> (i32, i32) {
    %c0_i32 = arith.constant 0 : i32
    %c0_i32_0 = arith.constant 0 : i32
    return %arg0, %c0_i32 : i32, i32
  }
  func.func @transform_4(%arg0: i32, %arg1: i32) -> (i32, i32) {
    %c0_i32 = arith.constant 0 : i32
    %c0_i32_0 = arith.constant 0 : i32
    %c0_i32_1 = arith.constant 0 : i32
    return %c0_i32, %c0_i32_0 : i32, i32
  }
  func.func @transform_5(%arg0: i32, %arg1: i32) -> (i32, i32) {
    %c0_i32 = arith.constant 0 : i32
    %c0_i32_0 = arith.constant 0 : i32
    %c0_i32_1 = arith.constant 0 : i32
    return %c0_i32, %c0_i32_0 : i32, i32
  }
  func.func @transform_6(%arg0: i32, %arg1: i32) -> (i32, i32) {
    %c0_i32 = arith.constant 0 : i32
    %c0_i32_0 = arith.constant 0 : i32
    return %arg0, %c0_i32 : i32, i32
  }
}

</mosaic_0001>

<bundles_post_ra>
// kernel: tpu_custom_call.1
= control target key start
LH: loop header
LB: loop body
LE: loop exit
PB: predicated region body
PF: predicated region fallthrough
CT: control target
= control target key end

     0   :  { %11 = vsyncpa [#allocation4], 0  ;;  %s1595_s0 = inlined_call_operand.hbm [shape: bf16[128,128], index: 0, kind: input, shape index: {}]   ;;  %s1596_s1 = inlined_call_operand.hbm [shape: bf16[128,128], index: 1, kind: input, shape index: {}]   ;;  %s1597_s2 = inlined_call_operand.hbm [shape: bf16[128,128], index: 2, kind: input, shape index: {}]   ;;  %s1598_s3 = inlined_call_operand.vmem [shape: f32[128,1], index: 3, kind: input, shape index: {}]   ;;  %s1599_s4 = inlined_call_operand.vmem [shape: bf16[256,128], index: 4, kind: input, shape index: {}]   ;;  %s1600_s5 = inlined_call_operand.vmem [shape: f32[1,128], index: 5, kind: input, shape index: {}]   ;;  %s1601_s6 = inlined_call_operand.hbm [shape: bf16[128,128], index: 6, kind: output, shape index: {}]  }
   0x1   :  { %12 = vsyncpa [#allocation7], 0 }
   0x2   :  { %13 = vsyncpa [#allocation5], 0  ;;  %s1369_s21 = smov [#allocation6]   ;;  %s1370_s23 = smov [#allocation3]  }
   0x3   :  { %s31_s22 = sshll.u32 %s1369_s21, 4  ;;  %s19_s24 = sshll.u32 %s1370_s23, 4  ;;  %s32_s22 = int_to_ptr.vmem [resolvable:$true] %s31_s22  ;;  %s1411_s24 = int_to_ptr.vmem [resolvable:$true] %s19_s24 }
   0x4   :  { %s1275_s27 = scalar_lea.hbm %s1596_s1, 1024 }
   0x5   :  { %p1276_p0 = scmp.ne.s32.totalorder %s1596_s1, %s1275_s27  ;;  %p1279_p1 = scmp.lt.u32.totalorder %s1275_s27, %s1596_s1 }
   0x7   :  { %p1281_p2 = pnand %p1279_p1, %p1276_p0 }
   0x9   :  { %1284 = shalt.err (!%p1281_p2)
}
   0xa   :  { %s1285_s8 = scalar_lea.vmem %s32_s22, 1024  ;;  %p1290_p4 = scmp.lt.s32.totalorder %s32_s22, %s32_s22 }
   0xb   :  { %p1286_p3 = scmp.ne.s32.totalorder %s32_s22, %s1285_s8  ;;  %p1291_p5 = scmp.lt.s32.totalorder %s1285_s8, %s1285_s8 }
   0xd   :  { %p1292_p6 = por %p1291_p5, %p1290_p4 }
   0xf   :  { %p1293_p7 = pnand %p1292_p6, %p1286_p3 }
  0x11   :  { %1296 = shalt.err (!%p1293_p7)
}
  0x12   :  { %s1371_s9 = smov 64   ;;  %s1372_s10 = smov 4  }
  0x13   :  { %37 = dma.hbm_to_vmem [thread:$0]  %s1596_s1, 1024, %s32_s22, [#allocation7], %s1371_s9, %s1371_s9, %s1372_s10  }
  0x14   :  { %s1297_s15 = scalar_lea.hbm %s1595_s0, 1024 }
  0x15   :  { %p1298_p8 = scmp.ne.s32.totalorder %s1595_s0, %s1297_s15  ;;  %p1301_p9 = scmp.lt.u32.totalorder %s1297_s15, %s1595_s0 }
  0x17   :  { %p1303_p10 = pnand %p1301_p9, %p1298_p8 }
  0x19   :  { %1306 = shalt.err (!%p1303_p10)
}
  0x1a   :  { %s1307_s20 = scalar_lea.vmem %s1411_s24, 1024  ;;  %p1312_p12 = scmp.lt.s32.totalorder %s1411_s24, %s1411_s24 }
  0x1b   :  { %p1308_p11 = scmp.ne.s32.totalorder %s1411_s24, %s1307_s20  ;;  %p1313_p13 = scmp.lt.s32.totalorder %s1307_s20, %s1307_s20 }
  0x1d   :  { %p1314_p0 = por %p1313_p13, %p1312_p12 }
  0x1f   :  { %p1315_p1 = pnand %p1314_p0, %p1308_p11 }
  0x21   :  { %1318 = shalt.err (!%p1315_p1)
}
  0x22   :  { %25 = dma.hbm_to_vmem [thread:$0]  %s1595_s0, 1024, %s1411_s24, [#allocation4], %s1371_s9, %s1371_s9, %s1372_s10  }
  0x23   :  { %s1373_s22 = smov [#allocation8]   ;;  %s1319_s27 = scalar_lea.hbm %s1597_s2, 1024 }
  0x24   :  { %s43_s23 = sshll.u32 %s1373_s22, 4  ;;  %p1320_p2 = scmp.ne.s32.totalorder %s1597_s2, %s1319_s27  ;;  %s44_s23 = int_to_ptr.vmem [resolvable:$true] %s43_s23 }
  0x25   :  { %p1323_p3 = scmp.lt.u32.totalorder %s1319_s27, %s1597_s2 }
  0x27   :  { %p1325_p4 = pnand %p1323_p3, %p1320_p2 }
  0x29   :  { %1328 = shalt.err (!%p1325_p4)
}
  0x2a   :  { %s1329_s8 = scalar_lea.vmem %s44_s23, 1024  ;;  %p1334_p6 = scmp.lt.s32.totalorder %s44_s23, %s44_s23 }
  0x2b   :  { %p1330_p5 = scmp.ne.s32.totalorder %s44_s23, %s1329_s8  ;;  %p1335_p7 = scmp.lt.s32.totalorder %s1329_s8, %s1329_s8 }
  0x2d   :  { %p1336_p8 = por %p1335_p7, %p1334_p6 }
  0x2f   :  { %p1337_p9 = pnand %p1336_p8, %p1330_p5 }
  0x31   :  { %1340 = shalt.err (!%p1337_p9)
}
  0x32   :  { %49 = dma.hbm_to_vmem [thread:$0]  %s1597_s2, 1024, %s44_s23, [#allocation7], %s1371_s9, %s1371_s9, %s1372_s10  }
  0x33   :  { %1363 = dma.done.wait [#allocation4], 1024  }
  0x34   :  { %1364 = vsyncadd [#allocation4], 4294966272 }
  0x35   :  { %1365 = dma.done.wait [#allocation7], 2048  }
  0x36   :  { %1366 = vsyncadd [#allocation7], 4294965248  ;;  %v1374_v0 = vmov 0   ;;  %v1243_v1 = vld [vmem:[#allocation6] sm:$0xff]   ;;  %v1244_v2 = vld [vmem:[#allocation6 + $0x8] sm:$0xff]  }
  0x37   :  { %1241 = vset.pattern.permute.xlu0 %v1374_v0  ;;  %1242 = vset.pattern.permute.xlu1 %v1374_v0  ;;  %v1245_v3 = vld [vmem:[#allocation6 + $0x10] sm:$0xff]   ;;  %v1246_v4 = vld [vmem:[#allocation6 + $0x18] sm:$0xff]   ;;  %v1251_v5 = vld [vmem:[#allocation3] sm:$0xff]  }
  0x38   :  { %1186 = vmatprep.subr.bf16.mxu0 %v1243_v1  ;;  %1202 = vmatprep.mubr.bf16.mxu0 %v1251_v5  ;;  %v1247_v6 = vld [vmem:[#allocation6 + $0x20] sm:$0xff]   ;;  %v1248_v7 = vld [vmem:[#allocation6 + $0x28] sm:$0xff]   ;;  %v437_v9 = vld [vmem:[%s1598_s3 + $0x30] sm:$0xff] }
  0x39   :  { %1187 = vmatpush3.bf16.msra.mxu0 %v1243_v1  ;;  %v435_v8 = vld [vmem:[%s1598_s3 + $0x20] sm:$0xff]  ;;  %479 = vperm.xlu1 %1242, %v437_v9   ;;  %v436_v10 = vld [vmem:[%s1598_s3 + $0x28] sm:$0xff]  ;;  %v438_v11 = vld [vmem:[%s1598_s3 + $0x38] sm:$0xff] }
  0x3a   :  { %1188 = vmatprep.subr.bf16.mxu0 %v1244_v2  ;;  %469 = vperm.xlu0 %1241, %v435_v8   ;;  %v1249_v12 = vld [vmem:[#allocation6 + $0x30] sm:$0xff]   ;;  %v439_v13 = vld [vmem:[%s1598_s3 + $0x40] sm:$0xff]  ;;  %v440_v14 = vld [vmem:[%s1598_s3 + $0x48] sm:$0xff] }
  0x3b   :  { %v1259_v15 = vld [vmem:[%s1599_s4 + $0x40] sm:$0xff]   ;;  %v1250_v16 = vld [vmem:[#allocation6 + $0x38] sm:$0xff]   ;;  %v441_v17 = vld [vmem:[%s1598_s3 + $0x50] sm:$0xff] }
  0x3c   :  { %v1260_v18 = vld [vmem:[%s1599_s4] sm:$0xff]   ;;  %1218 = vmatprep.subr.bf16.mxu1 %v1259_v15  ;;  %v1261_v19 = vld [vmem:[%s1599_s4 + $0x48] sm:$0xff]   ;;  %v442_v20 = vld [vmem:[%s1598_s3 + $0x58] sm:$0xff] }
  0x3d   :  { %1189 = vmatpush3.bf16.msra.mxu0 %v1244_v2  ;;  %484 = vperm.xlu1 %1242, %v438_v11   ;;  %v1252_v21 = vld [vmem:[#allocation3 + $0x8] sm:$0xff]   ;;  %v431_v22 = vld [vmem:[%s1598_s3] sm:$0xff]  ;;  %v1253_v25 = vld [vmem:[#allocation3 + $0x10] sm:$0xff]  }
  0x3e   :  { %1190 = vmatprep.subr.bf16.mxu0 %v1245_v3  ;;  %474 = vperm.xlu0 %1241, %v436_v10   ;;  %v432_v23 = vld [vmem:[%s1598_s3 + $0x8] sm:$0xff]  ;;  %v1263_v26 = vld [vmem:[%s1599_s4 + $0x50] sm:$0xff]   ;;  %v443_v27 = vld [vmem:[%s1598_s3 + $0x60] sm:$0xff] }
  0x3f   :  { %1226 = vmatpush3.bf16.msra.mxu1 %v1260_v18  ;;  %v1262_v24 = vld [vmem:[%s1599_s4 + $0x8] sm:$0xff]   ;;  %v1264_v29 = vld [vmem:[%s1599_s4 + $0x10] sm:$0xff]   ;;  %v1265_v30 = vld [vmem:[%s1599_s4 + $0x58] sm:$0xff]  }
  0x40   :  { %1219 = vmatprep.subr.bf16.mxu1 %v1261_v19  ;;  %v444_v28 = vld [vmem:[%s1598_s3 + $0x68] sm:$0xff]  ;;  %v1266_v31 = vld [vmem:[%s1599_s4 + $0x18] sm:$0xff]   ;;  %v1267_v32 = vld [vmem:[%s1599_s4 + $0x60] sm:$0xff]  }
  0x41   :  { %1191 = vmatpush3.bf16.msra.mxu0 %v1245_v3  ;;  %494 = vperm.xlu1 %1242, %v440_v14   ;;  %v1254_v33 = vld [vmem:[#allocation3 + $0x18] sm:$0xff]   ;;  %v433_v34 = vld [vmem:[%s1598_s3 + $0x10] sm:$0xff]  ;;  %v1255_v36 = vld [vmem:[#allocation3 + $0x20] sm:$0xff]  }
  0x42   :  { %1192 = vmatprep.subr.bf16.mxu0 %v1246_v4  ;;  %489 = vperm.xlu0 %1241, %v439_v13   ;;  %v434_v35 = vld [vmem:[%s1598_s3 + $0x18] sm:$0xff]  ;;  %v1268_v37 = vld [vmem:[%s1599_s4 + $0x20] sm:$0xff]   ;;  %v445_v38 = vld [vmem:[%s1598_s3 + $0x70] sm:$0xff] }
  0x43   :  { %1227 = vmatpush3.bf16.msra.mxu1 %v1262_v24  ;;  %v446_v39 = vld [vmem:[%s1598_s3 + $0x78] sm:$0xff]  ;;  %v1269_v40 = vld [vmem:[%s1599_s4 + $0x68] sm:$0xff]   ;;  %v1257_v43 = vld [vmem:[#allocation3 + $0x30] sm:$0xff]  }
  0x44   :  { %1220 = vmatprep.subr.bf16.mxu1 %v1263_v26  ;;  %v1270_v41 = vld [vmem:[%s1599_s4 + $0x28] sm:$0xff]   ;;  %v1258_v44 = vld [vmem:[#allocation3 + $0x38] sm:$0xff]   ;;  %v1271_v45 = vld [vmem:[%s1599_s4 + $0x70] sm:$0xff]  }
  0x45   :  { %1193 = vmatpush3.bf16.msra.mxu0 %v1246_v4  ;;  %504 = vperm.xlu1 %1242, %v442_v20   ;;  %v1256_v42 = vld [vmem:[#allocation3 + $0x28] sm:$0xff]   ;;  %v1272_v46 = vld [vmem:[%s1599_s4 + $0x30] sm:$0xff]   ;;  %v1273_v47 = vld [vmem:[%s1599_s4 + $0x78] sm:$0xff]  }
  0x46   :  { %1194 = vmatprep.subr.bf16.mxu0 %v1247_v6  ;;  %499 = vperm.xlu0 %1241, %v441_v17   ;;  %v1274_v48 = vld [vmem:[%s1599_s4 + $0x38] sm:$0xff]   ;;  %v1021_v49 = vld [vmem:[#allocation8] sm:$0xff]   ;;  %v1093_v50 = vld [vmem:[#allocation8 + $0x10] sm:$0xff]  }
  0x47   :  { %1228 = vmatpush3.bf16.msra.mxu1 %v1264_v29  ;;  %790 = vmatprep.mubr.bf16.mxu1 %v1093_v50  ;;  %v1092_v11 = vld [vmem:[#allocation8 + $0x8] sm:$0xff]   ;;  %v1562_v50 = vld [vmem:[%s1600_s5] ss:$0 sm:$0xff]  ;;  %s1375_s5 = smov [#allocation9]  }
  0x48   :  { %1221 = vmatprep.subr.bf16.mxu1 %v1265_v30  ;;  %s940_s23 = sshll.u32 %s1375_s5, 4  ;;  %s941_s23 = int_to_ptr.vmem [resolvable:$true] %s940_s23 }
  0x49   :  { %1195 = vmatpush3.bf16.msra.mxu0 %v1247_v6  ;;  %454 = vperm.xlu1 %1242, %v432_v23   ;;  %s1341_s25 = scalar_lea.vmem %s941_s23, 1024  ;;  %p1346_p11 = scmp.lt.s32.totalorder %s941_s23, %s941_s23 }
  0x4a   :  { %1196 = vmatprep.subr.bf16.mxu0 %v1248_v7  ;;  %449 = vperm.xlu0 %1241, %v431_v22   ;;  %v1094_v22 = vld [vmem:[#allocation8 + $0x18] sm:$0xff]   ;;  %p1342_p10 = scmp.ne.s32.totalorder %s941_s23, %s1341_s25  ;;  %p1347_p12 = scmp.lt.s32.totalorder %s1341_s25, %s1341_s25 }
  0x4b   :  { %1229 = vmatpush3.bf16.msra.mxu1 %v1266_v31 }
  0x4c   :  { %1222 = vmatprep.subr.bf16.mxu1 %v1267_v32  ;;  %p1348_p13 = por %p1347_p12, %p1346_p11 }
  0x4d   :  { %1197 = vmatpush3.bf16.msra.mxu0 %v1248_v7  ;;  %514 = vperm.xlu1 %1242, %v444_v28  }
  0x4e   :  { %1198 = vmatprep.subr.bf16.mxu0 %v1249_v12  ;;  %509 = vperm.xlu0 %1241, %v443_v27   ;;  %p1349_p0 = pnand %p1348_p13, %p1342_p10 }
  0x4f   :  { %1230 = vmatpush3.bf16.msra.mxu1 %v1268_v37 }
  0x50   :  { %1223 = vmatprep.subr.bf16.mxu1 %v1269_v40 }
  0x51   :  { %1199 = vmatpush3.bf16.msra.mxu0 %v1249_v12  ;;  %464 = vperm.xlu1 %1242, %v434_v35  }
  0x52   :  { %1200 = vmatprep.subr.bf16.mxu0 %v1250_v16  ;;  %459 = vperm.xlu0 %1241, %v433_v34  }
  0x53   :  { %1231 = vmatpush3.bf16.msra.mxu1 %v1270_v41 }
  0x54   :  { %1224 = vmatprep.subr.bf16.mxu1 %v1271_v45 }
  0x55   :  { %1201 = vmatpush3.bf16.msra.mxu0 %v1250_v16  ;;  %524 = vperm.xlu1 %1242, %v446_v39  }
  0x56   :  { %1122 = vmatprep.subr.bf16.mxu0 %v1259_v15  ;;  %519 = vperm.xlu0 %1241, %v445_v38  }
  0x57   :  { %1232 = vmatpush3.bf16.msra.mxu1 %v1272_v46 }
  0x58   :  { %1203 = vmatmul.mubr.bf16.vlgmr.msra.gmra.mrb[0].mxu0 %v1252_v21  ;;  %1225 = vmatprep.subr.bf16.mxu1 %v1273_v47 }
  0x59   :  { %1206 = vmatprep.mubr.bf16.mxu0 %v1253_v25  ;;  %1123 = vmatpush3.bf16.msra.mxu0 %v1260_v18 }
  0x5a   :  { %1124 = vmatprep.subr.bf16.mxu0 %v1261_v19 }
  0x5b   :  { %1233 = vmatpush3.bf16.msra.mxu1 %v1274_v48 }
  0x5d   :  { %1125 = vmatpush3.bf16.msra.mxu0 %v1262_v24 }
  0x5e   :  { %1126 = vmatprep.subr.bf16.mxu0 %v1263_v26 }
  0x60   :  { %1207 = vmatmul.mubr.bf16.gmra.mrb[4].mxu0 %v1254_v33  ;;  %v1095_v33 = vld [vmem:[#allocation8 + $0x20] sm:$0xff]  }
  0x61   :  { %1210 = vmatprep.mubr.bf16.mxu0 %v1255_v36  ;;  %1127 = vmatpush3.bf16.msra.mxu0 %v1264_v29 }
  0x62   :  { %1128 = vmatprep.subr.bf16.mxu0 %v1265_v30 }
  0x65   :  { %1129 = vmatpush3.bf16.msra.mxu0 %v1266_v31 }
  0x66   :  { %1130 = vmatprep.subr.bf16.mxu0 %v1267_v32 }
  0x68   :  { %1211 = vmatmul.mubr.bf16.gmra.mrb[8].mxu0 %v1256_v42 }
  0x69   :  { %1214 = vmatprep.mubr.bf16.mxu0 %v1257_v43  ;;  %1131 = vmatpush3.bf16.msra.mxu0 %v1268_v37 }
  0x6a   :  { %1132 = vmatprep.subr.bf16.mxu0 %v1269_v40 }
  0x6d   :  { %1133 = vmatpush3.bf16.msra.mxu0 %v1270_v41 }
  0x6e   :  { %1134 = vmatprep.subr.bf16.mxu0 %v1271_v45 }
  0x70   :  { %1215 = vmatmul.mubr.bf16.gmra.mrb[12].mxu0 %v1258_v44 }
  0x71   :  { %1135 = vmatpush3.bf16.msra.mxu0 %v1272_v46  ;;  %774 = vmatprep.mubr.bf16.mxu0 %v1021_v49  ;;  %v1096_v46 = vld [vmem:[#allocation8 + $0x28] sm:$0xff]  }
  0x72   :  { %1136 = vmatprep.subr.bf16.mxu0 %v1273_v47  ;;  %v1097_v47 = vld [vmem:[#allocation8 + $0x30] sm:$0xff]  }
  0x75   :  { %1137 = vmatpush3.bf16.msra.mxu0 %v1274_v48  ;;  %v1098_v48 = vld [vmem:[#allocation8 + $0x38] sm:$0xff]  }
  0xb8   :  { %v480_v52 = vpop.permute.xlu1 %479 }
  0xb9   :  { %v470_v51 = vpop.permute.xlu0 %469 }
  0xbc   :  { %v485_v54 = vpop.permute.xlu1 %484 }
  0xbd   :  { %v475_v53 = vpop.permute.xlu0 %474 }
  0xc0   :  { %v495_v56 = vpop.permute.xlu1 %494 }
  0xc1   :  { %v490_v55 = vpop.permute.xlu0 %489 }
  0xc4   :  { %v505_v58 = vpop.permute.xlu1 %504 }
  0xc5   :  { %v500_v57 = vpop.permute.xlu0 %499 }
  0xc8   :  { %v455_v60 = vpop.permute.xlu1 %454 }
  0xc9   :  { %v450_v59 = vpop.permute.xlu0 %449 }
  0xcc   :  { %v515_v62 = vpop.permute.xlu1 %514 }
  0xcd   :  { %v510_v61 = vpop.permute.xlu0 %509 }
  0xd0   :  { %v465_v1 = vpop.permute.xlu1 %464 }
  0xd1   :  { %v460_v63 = vpop.permute.xlu0 %459 }
  0xd4   :  { %v525_v37 = vpop.permute.xlu1 %524 }
  0xd5   :  { %v520_v35 = vpop.permute.xlu0 %519 }
 0x12b   :  { %v1204_v0 = vpop.f32.mrb[0].mxu0 }
 0x12c   :  { %v317_v2 = vpop.f32.mrb[1].mxu0  ;;  %v529_v4 = vmul.f32 %v1204_v0, %v460_v63 }
 0x12d   :  { %v1205_v3 = vpop.f32.mrb[2].mxu0  ;;  %v527_v7 = vmul.f32 %v450_v59, %v317_v2 }
 0x12e   :  { %v530_v5 = vmul.f32 %v1205_v3, %v465_v1  ;;  %v320_v6 = vpop.f32.mrb[3].mxu0 }
 0x12f   :  { %v528_v8 = vmul.f32 %v455_v60, %v320_v6 }
 0x130   :  { %v593_v9 = vpack.c.bf16 %v530_v5, %v529_v4 }
 0x131   :  { %v591_v10 = vpack.c.bf16 %v528_v8, %v527_v7 }
 0x133   :  { %v1208_v12 = vpop.f32.mrb[4].mxu0  ;;  %775 = vmatmul.mubr.bf16.vlgmr.msra.gmra.mrb[16].mxu0 %v591_v10 }
 0x134   :  { %v333_v13 = vpop.f32.mrb[5].mxu0  ;;  %782 = vmatprep.mubr.bf16.mxu0 %v1092_v11  ;;  %v533_v15 = vmul.f32 %v1208_v12, %v480_v52 }
 0x135   :  { %v1209_v14 = vpop.f32.mrb[6].mxu0  ;;  %v531_v18 = vmul.f32 %v470_v51, %v333_v13 }
 0x136   :  { %v534_v16 = vmul.f32 %v1209_v14, %v485_v54  ;;  %v336_v17 = vpop.f32.mrb[7].mxu0 }
 0x137   :  { %v532_v19 = vmul.f32 %v475_v53, %v336_v17 }
 0x138   :  { %v597_v20 = vpack.c.bf16 %v534_v16, %v533_v15 }
 0x139   :  { %v595_v21 = vpack.c.bf16 %v532_v19, %v531_v18 }
 0x13b   :  { %v1212_v23 = vpop.f32.mrb[8].mxu0  ;;  %783 = vmatmul.mubr.bf16.gmra.mrb[20].mxu0 %v593_v9  ;;  %791 = vmatmul.mubr.bf16.vlgmr.msra.gmra.mrb[0].mxu1 %v595_v21 }
 0x13c   :  { %v349_v24 = vpop.f32.mrb[9].mxu0  ;;  %798 = vmatprep.mubr.bf16.mxu1 %v1094_v22  ;;  %v537_v26 = vmul.f32 %v1212_v23, %v500_v57 }
 0x13d   :  { %v1213_v25 = vpop.f32.mrb[10].mxu0  ;;  %v535_v29 = vmul.f32 %v490_v55, %v349_v24 }
 0x13e   :  { %v538_v27 = vmul.f32 %v1213_v25, %v505_v58  ;;  %v352_v28 = vpop.f32.mrb[11].mxu0 }
 0x13f   :  { %v536_v30 = vmul.f32 %v495_v56, %v352_v28 }
 0x140   :  { %v601_v31 = vpack.c.bf16 %v538_v27, %v537_v26 }
 0x141   :  { %v599_v32 = vpack.c.bf16 %v536_v30, %v535_v29 }
 0x143   :  { %v1216_v34 = vpop.f32.mrb[12].mxu0  ;;  %799 = vmatmul.mubr.bf16.gmra.mrb[4].mxu1 %v597_v20 }
 0x144   :  { %v365_v36 = vpop.f32.mrb[13].mxu0  ;;  %806 = vmatprep.mubr.bf16.mxu1 %v1095_v33  ;;  %v541_v39 = vmul.f32 %v1216_v34, %v520_v35 }
 0x145   :  { %v1217_v38 = vpop.f32.mrb[14].mxu0  ;;  %v539_v42 = vmul.f32 %v510_v61, %v365_v36 }
 0x146   :  { %v542_v40 = vmul.f32 %v1217_v38, %v525_v37  ;;  %v368_v41 = vpop.f32.mrb[15].mxu0 }
 0x147   :  { %v540_v43 = vmul.f32 %v515_v62, %v368_v41 }
 0x148   :  { %v605_v44 = vpack.c.bf16 %v542_v40, %v541_v39 }
 0x149   :  { %v603_v45 = vpack.c.bf16 %v540_v43, %v539_v42 }
 0x14b   :  { %807 = vmatmul.mubr.bf16.gmra.mrb[8].mxu1 %v599_v32 }
 0x14c   :  { %814 = vmatprep.mubr.bf16.mxu1 %v1096_v46 }
 0x153   :  { %815 = vmatmul.mubr.bf16.gmra.mrb[12].mxu1 %v601_v31 }
 0x154   :  { %822 = vmatprep.mubr.bf16.mxu1 %v1097_v47 }
 0x15b   :  { %823 = vmatmul.mubr.bf16.gmra.mrb[16].mxu1 %v603_v45 }
 0x15c   :  { %830 = vmatprep.mubr.bf16.mxu1 %v1098_v48 }
 0x163   :  { %831 = vmatmul.mubr.bf16.gmra.mrb[20].mxu1 %v605_v44 }
 0x206   :  { %v1138_v49 = vpop.f32.mrb[16].mxu0 }
 0x207   :  { %v1139_v51 = vpop.f32.mrb[17].mxu0 }
 0x208   :  { %v1140_v52 = vadd.f32 %v1139_v51, %v1138_v49  ;;  %v1141_v53 = vpop.f32.mrb[18].mxu0 }
 0x209   :  { %v1142_v54 = vpop.f32.mrb[19].mxu0 }
 0x20a   :  { %v777_v55 = vadd.f32 %v1140_v52, %v1562_v50  ;;  %v1143_v56 = vadd.f32 %v1142_v54, %v1141_v53 }
 0x20c   :  { %v780_v57 = vadd.f32 %v1143_v56, %v1562_v50  ;;  %v839_v58 = vmax.f32 %v777_v55, 0.0 }
 0x20e   :  { %v840_v59 = vmax.f32 %v780_v57, 0.0  ;;  %v1144_v60 = vpop.f32.mrb[20].mxu0  ;;  %v1150_v61 = vpop.f32.mrb[0].mxu1 }
 0x20f   :  { %v1145_v62 = vpop.f32.mrb[21].mxu0  ;;  %v1151_v63 = vpop.f32.mrb[1].mxu1 }
 0x210   :  { %v1055_v0 = vpack.c.bf16 %v840_v59, %v839_v58  ;;  %v1146_v1 = vadd.f32 %v1145_v62, %v1144_v60  ;;  %v1152_v2 = vadd.f32 %v1151_v63, %v1150_v61  ;;  %v1147_v3 = vpop.f32.mrb[22].mxu0  ;;  %v1153_v4 = vpop.f32.mrb[2].mxu1 }
 0x211   :  { %v1148_v5 = vpop.f32.mrb[23].mxu0  ;;  %v1154_v6 = vpop.f32.mrb[3].mxu1 }
 0x212   :  { %1056 = vst [vmem:[#allocation9] sm:$0xff] %v1055_v0   ;;  %v785_v7 = vadd.f32 %v1146_v1, %v1562_v50  ;;  %v793_v8 = vadd.f32 %v1152_v2, %v1562_v50  ;;  %v1149_v9 = vadd.f32 %v1148_v5, %v1147_v3  ;;  %v1155_v10 = vadd.f32 %v1154_v6, %v1153_v4 }
 0x214   :  { %v788_v11 = vadd.f32 %v1149_v9, %v1562_v50  ;;  %v796_v12 = vadd.f32 %v1155_v10, %v1562_v50  ;;  %v841_v13 = vmax.f32 %v785_v7, 0.0  ;;  %v843_v14 = vmax.f32 %v793_v8, 0.0 }
 0x216   :  { %v842_v15 = vmax.f32 %v788_v11, 0.0  ;;  %v844_v16 = vmax.f32 %v796_v12, 0.0  ;;  %v1156_v17 = vpop.f32.mrb[4].mxu1 }
 0x217   :  { %v1157_v18 = vpop.f32.mrb[5].mxu1 }
 0x218   :  { %v1060_v19 = vpack.c.bf16 %v842_v15, %v841_v13  ;;  %v1065_v20 = vpack.c.bf16 %v844_v16, %v843_v14  ;;  %v1158_v21 = vadd.f32 %v1157_v18, %v1156_v17  ;;  %v1159_v22 = vpop.f32.mrb[6].mxu1 }
 0x219   :  { %v1160_v23 = vpop.f32.mrb[7].mxu1 }
 0x21a   :  { %1099 = vst [vmem:[#allocation9 + $0x8] sm:$0xff] %v1060_v19   ;;  %1100 = vst [vmem:[#allocation9 + $0x10] sm:$0xff] %v1065_v20   ;;  %v801_v24 = vadd.f32 %v1158_v21, %v1562_v50  ;;  %v1161_v25 = vadd.f32 %v1160_v23, %v1159_v22 }
 0x21c   :  { %v804_v26 = vadd.f32 %v1161_v25, %v1562_v50  ;;  %v845_v27 = vmax.f32 %v801_v24, 0.0 }
 0x21e   :  { %v846_v28 = vmax.f32 %v804_v26, 0.0  ;;  %v1162_v29 = vpop.f32.mrb[8].mxu1 }
 0x21f   :  { %v1163_v30 = vpop.f32.mrb[9].mxu1 }
 0x220   :  { %v1070_v31 = vpack.c.bf16 %v846_v28, %v845_v27  ;;  %v1164_v32 = vadd.f32 %v1163_v30, %v1162_v29  ;;  %v1165_v33 = vpop.f32.mrb[10].mxu1 }
 0x221   :  { %v1166_v34 = vpop.f32.mrb[11].mxu1 }
 0x222   :  { %1101 = vst [vmem:[#allocation9 + $0x18] sm:$0xff] %v1070_v31   ;;  %v809_v35 = vadd.f32 %v1164_v32, %v1562_v50  ;;  %v1167_v36 = vadd.f32 %v1166_v34, %v1165_v33 }
 0x224   :  { %v812_v37 = vadd.f32 %v1167_v36, %v1562_v50  ;;  %v847_v38 = vmax.f32 %v809_v35, 0.0 }
 0x226   :  { %v848_v39 = vmax.f32 %v812_v37, 0.0  ;;  %v1168_v40 = vpop.f32.mrb[12].mxu1 }
 0x227   :  { %v1169_v41 = vpop.f32.mrb[13].mxu1 }
 0x228   :  { %v1075_v42 = vpack.c.bf16 %v848_v39, %v847_v38  ;;  %v1170_v43 = vadd.f32 %v1169_v41, %v1168_v40  ;;  %v1171_v44 = vpop.f32.mrb[14].mxu1 }
 0x229   :  { %v1172_v45 = vpop.f32.mrb[15].mxu1 }
 0x22a   :  { %1102 = vst [vmem:[#allocation9 + $0x20] sm:$0xff] %v1075_v42   ;;  %v817_v46 = vadd.f32 %v1170_v43, %v1562_v50  ;;  %v1173_v47 = vadd.f32 %v1172_v45, %v1171_v44 }
 0x22c   :  { %v820_v48 = vadd.f32 %v1173_v47, %v1562_v50  ;;  %v849_v49 = vmax.f32 %v817_v46, 0.0 }
 0x22e   :  { %v850_v51 = vmax.f32 %v820_v48, 0.0  ;;  %v1174_v52 = vpop.f32.mrb[16].mxu1 }
 0x22f   :  { %v1175_v53 = vpop.f32.mrb[17].mxu1 }
 0x230   :  { %v1080_v54 = vpack.c.bf16 %v850_v51, %v849_v49  ;;  %v1176_v55 = vadd.f32 %v1175_v53, %v1174_v52  ;;  %v1177_v56 = vpop.f32.mrb[18].mxu1 }
 0x231   :  { %v1178_v57 = vpop.f32.mrb[19].mxu1 }
 0x232   :  { %1103 = vst [vmem:[#allocation9 + $0x28] sm:$0xff] %v1080_v54   ;;  %v825_v58 = vadd.f32 %v1176_v55, %v1562_v50  ;;  %v1179_v59 = vadd.f32 %v1178_v57, %v1177_v56 }
 0x234   :  { %v828_v60 = vadd.f32 %v1179_v59, %v1562_v50  ;;  %v851_v61 = vmax.f32 %v825_v58, 0.0 }
 0x236   :  { %v852_v62 = vmax.f32 %v828_v60, 0.0  ;;  %v1180_v63 = vpop.f32.mrb[20].mxu1 }
 0x237   :  { %v1181_v0 = vpop.f32.mrb[21].mxu1 }
 0x238   :  { %v1085_v1 = vpack.c.bf16 %v852_v62, %v851_v61  ;;  %v1182_v2 = vadd.f32 %v1181_v0, %v1180_v63  ;;  %v1183_v3 = vpop.f32.mrb[22].mxu1 }
 0x239   :  { %v1184_v4 = vpop.f32.mrb[23].mxu1 }
 0x23a   :  { %1104 = vst [vmem:[#allocation9 + $0x30] sm:$0xff] %v1085_v1   ;;  %v833_v5 = vadd.f32 %v1182_v2, %v1562_v50  ;;  %v1185_v6 = vadd.f32 %v1184_v4, %v1183_v3 }
 0x23c   :  { %v836_v7 = vadd.f32 %v1185_v6, %v1562_v50  ;;  %v853_v8 = vmax.f32 %v833_v5, 0.0 }
 0x23e   :  { %v854_v9 = vmax.f32 %v836_v7, 0.0 }
 0x240   :  { %v1090_v10 = vpack.c.bf16 %v854_v9, %v853_v8 }
 0x242   :  { %1105 = vst [vmem:[#allocation9 + $0x38] sm:$0xff] %v1090_v10  }
 0x243   :  { %1352 = shalt.err (!%p1349_p0)
}
 0x244   :  { %s1353_s28 = scalar_lea.hbm %s1601_s6, 1024 }
 0x245   :  { %p1354_p1 = scmp.ne.s32.totalorder %s1601_s6, %s1353_s28  ;;  %p1357_p2 = scmp.lt.u32.totalorder %s1353_s28, %s1601_s6 }
 0x247   :  { %p1359_p3 = pnand %p1357_p2, %p1354_p1 }
 0x249   :  { %1362 = shalt.err (!%p1359_p3)
}
 0x24a   :  { %946 = dma.vmem_to_hbm [thread:$0]  %s941_s23, 1024, %s1601_s6, [#allocation5], %s1371_s9, %s1371_s9, %s1372_s10  }
 0x24b   :  { %1367 = dma.done.wait [#allocation5], 1024  }
 0x24c   :  { %1368 = vsyncadd [#allocation5], 4294966272 }
 0x24d   :  { %950 = vsyncpa [#allocation4], 1 }
 0x24e   :  { %951 = vsyncpa [#allocation7], 1 }
 0x24f   :  { %952 = vsyncpa [#allocation5], 1 }

</bundles_post_ra>
